<compile_context>
chip_gen: v7x
topology: tpu7x:2x2x1
jax: 0.10.0
libtpu: 0.0.40
codegen_flags: <defaults>
</compile_context>

<pallas_src>
import functools

import jax
import jax.numpy as jnp
from jax import lax
from jax.experimental import pallas as pl
from jax.experimental.pallas import tpu as pltpu


_TILE_BYTES = 1 << 20   # ~1 MiB pred tile per buffer (x2 double-buffered): safe
                        # under scoped-VMEM defaults on v5e (16 MiB), v6e, v7x.
_LANE = 128


def _fold_factor(n_rows, n_cls):
    """How many consecutive (b, t) positions to pack into one lane-dense row."""
    if n_cls >= _LANE:
        return 1
    k = min(_LANE // n_cls, 8)      # cap: each extra group costs one VPU compare
    while k > 1 and n_rows % k:
        k -= 1
    return k


def _nll_kernel(tgt_ref, pred_ref, out_ref, *, n_rows, rows_blk, k, steps_per_part):
    """Accumulate sum of -log(pred[row, target_lane]) over valid positions."""
    part = pl.program_id(0)
    step = pl.program_id(1)

    @pl.when(step == 0)
    def _():
        out_ref[...] = jnp.zeros_like(out_ref)

    blk = part * steps_per_part + step            # logical (unclamped) block index

    pred = pred_ref[...].astype(jnp.float32)      # (rows_blk, k*C), upcast per-tile
    logp = jnp.log(pred)                          # EUP; unselected lanes discarded

    tgt = tgt_ref[...]                            # (rows_blk, k) int32, -1 == padding
    lane = lax.broadcasted_iota(jnp.int32, pred.shape, 1)

    # One-hot of the target lane.  Sentinel -1 never matches, so padded
    # positions contribute nothing (fused validity + class select).
    onehot = lane == tgt[:, 0:1]
    for s in range(1, k):
        onehot = onehot | (lane == tgt[:, s:s + 1])

    # Rows past the logical end of the folded array (ragged last block or the
    # clamped duplicate block of the parallel split) must not contribute.
    row = lax.broadcasted_iota(jnp.int32, (rows_blk, 1), 0) + blk * rows_blk
    mask = onehot & (row < n_rows)

    out_ref[...] -= jnp.sum(jnp.where(mask, logp, 0.0))


@jax.jit
def our_nll_loss(pred, target, lengths):
    """pred: (B, T, C) probabilities; target: (B, T) int; lengths: (B,) int."""
    B, T, C = pred.shape
    BT = B * T
    k = _fold_factor(BT, C)
    L = k * C
    N = BT // k

    target = target.reshape(BT).astype(jnp.int32)
    lengths = lengths.astype(jnp.int32)

    # Valid-position mask and denominator, computed once wrapper-side (tiny).
    valid = (jnp.arange(T, dtype=jnp.int32)[None, :] < lengths[:, None]).reshape(BT)
    count = jnp.sum(valid.astype(jnp.float32))

    # Lane coordinate of each position's target inside its folded row
    # (group s of a folded row occupies lanes [s*C, (s+1)*C)); -1 marks padding.
    grp_off = (jnp.arange(BT, dtype=jnp.int32) % k) * C
    tgt_lane = jnp.where(valid, target + grp_off, -1).reshape(N, k)

    # Lane-dense fold of pred: (B, T, C) -> (N, k*C); row-major, no data reorder.
    pred_f = pred.reshape(N, L)

    # Row-block size targeting ~_TILE_BYTES per pred buffer.
    itemsize = jnp.dtype(pred.dtype).itemsize
    rows = max(8, (_TILE_BYTES // (L * itemsize)) // 8 * 8)
    R = N if N <= rows else rows
    total = -(-N // R)                        # number of row blocks
    num_parts = 2 if total >= 2 else 1        # megacore split (v7x: 2 TCs/chip)
    spp = -(-total // num_parts)              # streaming steps per part

    def blk_index(p, s):
        # Clamp so the (rare) extra step of the last part never DMAs past the
        # array; its rows are masked out inside the kernel via `row < n_rows`.
        return (jnp.minimum(p * spp + s, total - 1), 0)

    kernel = functools.partial(
        _nll_kernel, n_rows=N, rows_blk=R, k=k, steps_per_part=spp)

    partials = pl.pallas_call(
        kernel,
        out_shape=jax.ShapeDtypeStruct((num_parts, 1, 1), jnp.float32),
        grid=(num_parts, spp),
        in_specs=[
            pl.BlockSpec((R, k), blk_index),   # folded lane-targets (int32)
            pl.BlockSpec((R, L), blk_index),   # folded probabilities
        ],
        out_specs=pl.BlockSpec((1, 1, 1), lambda p, s: (p, 0, 0)),
        compiler_params=pltpu.CompilerParams(
            dimension_semantics=("parallel", "arbitrary")),
    )(tgt_lane, pred_f)

    return jnp.sum(partials) / count


def _reference(pred, target, lengths):
    # Pure-JAX reference of the PyTorch module (masked mean of -log p[target]).
    B, T, C = pred.shape
    picked = jnp.take_along_axis(pred, target[:, :, None], axis=-1)[:, :, 0]
    mask = jnp.arange(T)[None, :] < lengths[:, None]
    nll = -jnp.log(jnp.where(mask, picked, 1.0))
    return jnp.sum(jnp.where(mask, nll, 0.0)) / jnp.sum(mask)


if __name__ == "__main__":
    key = jax.random.PRNGKey(0)
    B, T, C = 2, 8, 32

    k1, k2 = jax.random.split(key)
    logits = jax.random.normal(k1, (B, T, C), dtype=jnp.float32)
    pred = jax.nn.softmax(logits, axis=-1)           # probabilities (module logs inside)
    target = jax.random.randint(k2, (B, T), 0, C, dtype=jnp.int32)
    lengths = jnp.array([8, 5], dtype=jnp.int32)     # descending, as pack_padded_sequence expects

    loss = our_nll_loss(pred, target, lengths)
    jax.block_until_ready(loss)

    ref = _reference(pred, target, lengths)
    assert jnp.allclose(loss, ref, rtol=1e-5, atol=1e-6), (loss, ref)

    print("KERNEL_OK")
</pallas_src>

<mosaic_0001>
module attributes {stable_mosaic.version = 11 : i64} {
  func.func @_nll_kernel(%arg0: i32, %arg1: i32, %arg2: memref<4x4xi32, #tpu.memory_space<vmem>>, %arg3: memref<4x128xf32, #tpu.memory_space<vmem>>, %arg4: memref<1x1x1xf32, #tpu.memory_space<vmem>>) attributes {dimension_semantics = [#tpu.dimension_semantics<parallel>, #tpu.dimension_semantics<arbitrary>], iteration_bounds = array<i64: 1, 1>, scalar_prefetch = 0 : i64, scratch_operands = 0 : i64, tpu.core_type = #tpu.core_type<tc>, window_params = [{transform_indices = @transform_0, window_bounds = array<i64: 4, 4>}, {transform_indices = @transform_1, window_bounds = array<i64: 4, 128>}, {transform_indices = @transform_2, window_bounds = array<i64: 1, 1, 1>}]} {
    %c0_i32 = arith.constant 0 : i32
    %0 = arith.cmpi eq, %arg1, %c0_i32 : i32
    %1 = arith.extui %0 : i1 to i32
    %c0_i32_0 = arith.constant 0 : i32
    %2 = arith.cmpi ne, %1, %c0_i32_0 : i32
    scf.if %2 {
      %cst_12 = arith.constant 0.000000e+00 : f32
      %42 = vector.broadcast %cst_12 : f32 to vector<1x1x1xf32>
      %c0_13 = arith.constant 0 : index
      %c0_14 = arith.constant 0 : index
      %c0_15 = arith.constant 0 : index
      %43 = vector.load %arg4[%c0_13, %c0_14, %c0_15] : memref<1x1x1xf32, #tpu.memory_space<vmem>>, vector<1x1x1xf32>
      tpu.vector_store %arg4[%c0_13, %c0_14, %c0_15], %42 {strides = array<i32>} : memref<1x1x1xf32, #tpu.memory_space<vmem>>, vector<1x1x1xf32>,
    } else {
    }
    %c1_i32 = arith.constant 1 : i32
    %3 = arith.muli %arg0, %c1_i32 : i32
    %4 = arith.addi %3, %arg1 : i32
    %c0 = arith.constant 0 : index
    %c0_1 = arith.constant 0 : index
    %5 = vector.load %arg3[%c0, %c0_1] : memref<4x128xf32, #tpu.memory_space<vmem>>, vector<4x128xf32>
    %6 = math.log %5 : vector<4x128xf32>
    %c0_2 = arith.constant 0 : index
    %c0_3 = arith.constant 0 : index
    %7 = vector.load %arg2[%c0_2, %c0_3] : memref<4x4xi32, #tpu.memory_space<vmem>>, vector<4x4xi32>
    %8 = tpu.iota {dimensions = array<i32: 1>} : vector<4x128xi32>
    %9 = vector.extract_strided_slice %7 {offsets = [0, 0], sizes = [4, 1], strides = [1, 1]} : vector<4x4xi32> to vector<4x1xi32>
    %10 = vector.broadcast %9 : vector<4x1xi32> to vector<4x128xi32>
    %11 = arith.cmpi eq, %8, %10 : vector<4x128xi32>
    %12 = vector.extract_strided_slice %7 {offsets = [0, 1], sizes = [4, 1], strides = [1, 1]} : vector<4x4xi32> to vector<4x1xi32>
    %13 = vector.broadcast %12 : vector<4x1xi32> to vector<4x128xi32>
    %14 = arith.cmpi eq, %8, %13 : vector<4x128xi32>
    %15 = arith.ori %11, %14 : vector<4x128xi1>
    %16 = vector.extract_strided_slice %7 {offsets = [0, 2], sizes = [4, 1], strides = [1, 1]} : vector<4x4xi32> to vector<4x1xi32>
    %17 = vector.broadcast %16 : vector<4x1xi32> to vector<4x128xi32>
    %18 = arith.cmpi eq, %8, %17 : vector<4x128xi32>
    %19 = arith.ori %15, %18 : vector<4x128xi1>
    %20 = vector.extract_strided_slice %7 {offsets = [0, 3], sizes = [4, 1], strides = [1, 1]} : vector<4x4xi32> to vector<4x1xi32>
    %21 = vector.broadcast %20 : vector<4x1xi32> to vector<4x128xi32>
    %22 = arith.cmpi eq, %8, %21 : vector<4x128xi32>
    %23 = arith.ori %19, %22 : vector<4x128xi1>
    %24 = tpu.iota {dimensions = array<i32: 0>} : vector<4x1xi32>
    %c4_i32 = arith.constant 4 : i32
    %25 = arith.muli %4, %c4_i32 : i32
    %26 = vector.broadcast %25 : i32 to vector<4x1xi32>
    %27 = arith.addi %24, %26 : vector<4x1xi32>
    %c4_i32_4 = arith.constant 4 : i32
    %28 = vector.broadcast %c4_i32_4 : i32 to vector<4x1xi32>
    %29 = arith.cmpi slt, %27, %28 : vector<4x1xi32>
    %30 = vector.broadcast %29 : vector<4x1xi1> to vector<4x128xi1>
    %31 = arith.andi %23, %30 : vector<4x128xi1>
    %c0_5 = arith.constant 0 : index
    %c0_6 = arith.constant 0 : index
    %c0_7 = arith.constant 0 : index
    %32 = vector.load %arg4[%c0_5, %c0_6, %c0_7] : memref<1x1x1xf32, #tpu.memory_space<vmem>>, vector<1x1x1xf32>
    %cst = arith.constant 0.000000e+00 : f32
    %33 = vector.broadcast %cst : f32 to vector<4x128xf32>
    %34 = arith.select %31, %6, %33 : vector<4x128xi1>, vector<4x128xf32>
    %35 = vector.shape_cast %34 : vector<4x128xf32> to vector<1x4x128xf32>
    %cst_8 = arith.constant dense<0.000000e+00> : vector<1xf32>
    %36 = vector.multi_reduction <add>, %35, %cst_8 [1, 2] : vector<1x4x128xf32> to vector<1xf32>
    %37 = vector.shape_cast %36 : vector<1xf32> to vector<1x1x1xf32>
    %38 = vector.extract %37[0, 0, 0] : f32 from vector<1x1x1xf32>
    %39 = vector.broadcast %38 : f32 to vector<1x1x1xf32>
    %40 = arith.subf %32, %39 : vector<1x1x1xf32>
    %c0_9 = arith.constant 0 : index
    %c0_10 = arith.constant 0 : index
    %c0_11 = arith.constant 0 : index
    %41 = vector.load %arg4[%c0_9, %c0_10, %c0_11] : memref<1x1x1xf32, #tpu.memory_space<vmem>>, vector<1x1x1xf32>
    tpu.vector_store %arg4[%c0_9, %c0_10, %c0_11], %40 {strides = array<i32>} : memref<1x1x1xf32, #tpu.memory_space<vmem>>, vector<1x1x1xf32>,
    return
  }
  func.func @transform_0(%arg0: i32, %arg1: i32) -> (i32, i32) {
    %c1_i32 = arith.constant 1 : i32
    %0 = arith.muli %arg0, %c1_i32 : i32
    %1 = arith.addi %0, %arg1 : i32
    %c0_i32 = arith.constant 0 : i32
    %2 = arith.minsi %1, %c0_i32 : i32
    %c0_i32_0 = arith.constant 0 : i32
    %c0_i32_1 = arith.constant 0 : i32
    return %2, %c0_i32_0 : i32, i32
  }
  func.func @transform_1(%arg0: i32, %arg1: i32) -> (i32, i32) {
    %c1_i32 = arith.constant 1 : i32
    %0 = arith.muli %arg0, %c1_i32 : i32
    %1 = arith.addi %0, %arg1 : i32
    %c0_i32 = arith.constant 0 : i32
    %2 = arith.minsi %1, %c0_i32 : i32
    %c0_i32_0 = arith.constant 0 : i32
    %c0_i32_1 = arith.constant 0 : i32
    return %2, %c0_i32_0 : i32, i32
  }
  func.func @transform_2(%arg0: i32, %arg1: i32) -> (i32, i32, i32) {
    %c0_i32 = arith.constant 0 : i32
    %c0_i32_0 = arith.constant 0 : i32
    %c0_i32_1 = arith.constant 0 : i32
    return %arg0, %c0_i32, %c0_i32_0 : i32, i32, i32
  }
}

</mosaic_0001>

<bundles_post_ra>
// kernel: our_nll_loss.1
= control target key start
LH: loop header
LB: loop body
LE: loop exit
PB: predicated region body
PF: predicated region fallthrough
CT: control target
= control target key end

     0   :  { %v189_v1 = vmov 0   ;;  %v190_v2 = vmov 2   ;;  %s230_s0 = inlined_call_operand.vmem [shape: s32[4,4], index: 0, kind: input, shape index: {}]   ;;  %s231_s1 = inlined_call_operand.vmem [shape: f32[4,128], index: 1, kind: input, shape index: {}]   ;;  %s232_s2 = inlined_call_operand.hbm [shape: f32[1,1,1], index: 2, kind: output, shape index: {}]  }
   0x1   :  { %v76_v0 = vld [vmem:[%s230_s0] sm:$0xf]  ;;  %158 = vset.pattern.permute.xlu0 %v189_v1  ;;  %160 = vset.pattern.permute.xlu1 %v190_v2 }
   0x2   :  { %7 = vsyncpa [#allocation3], 0  ;;  %80 = vperm.xlu0 %158, %v76_v0   ;;  %89 = vperm.xlu1 %160, %v76_v0   ;;  %v191_v3 = vmov 1   ;;  %v192_v4 = vmov 3   ;;  %v73_v5 = vld [vmem:[%s231_s1] sm:$0xf]  ;;  %v77_v6 = vlaneseq }
   0x3   :  { %163 = vlog2.f32 %v73_v5  ;;  %vm109_vm8 = vcmask 1043456   ;;  %vm70_vm10 = vcmask 0   ;;  %v193_v17 = vmov 0.0   ;;  %s194_s0 = smov [#allocation2]  }
   0x4   :  { %v78_v9 = vand.u32 127, %v77_v6  ;;  %v99_v10 = vshrl.u32 %v77_v6, 7  ;;  %71 = vst.msk [vmem:[#allocation2] sm:$0x1] %vm70_vm10, %v193_v17  ;;  %s130_s1 = sshll.u32 %s194_s0, 4  ;;  %s131_s1 = int_to_ptr.vmem [resolvable:$true] %s130_s1 }
   0x5   :  { %s165_s14 = scalar_lea.vmem %s131_s1, 16  ;;  %s169_s15 = scalar_lea.vmem %s131_s1, 32 }
   0x6   :  { %159 = vset.pattern.permute.xlu0 %v191_v3  ;;  %161 = vset.pattern.permute.xlu1 %v192_v4  ;;  %vm103_vm5 = vcmp.lt.s32.totalorder %v99_v10, 4  ;;  %p166_p0 = scmp.ne.s32.totalorder %s131_s1, %s165_s14  ;;  %p170_p1 = scmp.lt.s32.totalorder %s131_s1, %s131_s1 }
   0x7   :  { %84 = vperm.xlu0 %159, %v76_v0   ;;  %94 = vperm.xlu1 %161, %v76_v0   ;;  %p171_p2 = scmp.lt.s32.totalorder %s169_s15, %s165_s14 }
   0x9   :  { %p172_p3 = por %p171_p2, %p170_p1 }
   0xb   :  { %162 = vset.pattern.permute.xlu0 %v192_v4  ;;  %v107_v25 = vld [vmem:[#allocation2] sm:$0x1]  ;;  %p173_p4 = pnand %p172_p3, %p166_p0 }
   0xd   :  { %v164_v11 = vpop.eup %163 }
   0xe   :  { %v75_v14 = vmul.f32 0.6931472, %v164_v11 }
  0x81   :  { %v81_v7 = vpop.permute.xlu0 %80  ;;  %v90_v8 = vpop.permute.xlu1 %89 }
  0x82   :  { %vm82_vm0 = vcmp.eq.s32.totalorder %v78_v9, %v81_v7  ;;  %vm91_vm3 = vcmp.eq.s32.totalorder %v78_v9, %v90_v8 }
  0x86   :  { %v85_v12 = vpop.permute.xlu0 %84  ;;  %v95_v13 = vpop.permute.xlu1 %94 }
  0x87   :  { %vm86_vm1 = vcmp.eq.s32.totalorder %v78_v9, %v85_v12  ;;  %vm96_vm2 = vcmp.eq.s32.totalorder %v78_v9, %v95_v13 }
  0x88   :  { %vm87_vm4 = vmor %vm82_vm0, %vm86_vm1 }
  0x89   :  { %vm92_vm6 = vmor %vm87_vm4, %vm91_vm3 }
  0x8a   :  { %vm97_vm7 = vmor %vm92_vm6, %vm96_vm2 }
  0x8b   :  { %vm106_vm9 = vmand %vm97_vm7, %vm103_vm5 }
  0x8c   :  { %v108_v15 = vsel %vm106_vm9, %v75_v14, 0.0 }
  0x8d   :  { %v110_v16 = vsel %vm109_vm8, %v108_v15, 0.0 }
  0x8e   :  { %111 = vadd.xlane.f32.xlu1 %v110_v16 }
 0x11b   :  { %v112_v18 = vpop.xlane.xlu1 %111 }
 0x11c   :  { %v113_v19 = vrot.slane %v112_v18, 4 }
 0x11e   :  { %v114_v20 = vadd.f32 %v113_v19, %v112_v18 }
 0x120   :  { %v115_v21 = vrot.slane %v114_v20, 2 }
 0x122   :  { %v116_v22 = vadd.f32 %v115_v21, %v114_v20 }
 0x124   :  { %v117_v23 = vrot.slane %v116_v22, 1 }
 0x126   :  { %v118_v24 = vadd.f32 %v117_v23, %v116_v22 }
 0x128   :  { %150 = vpush %v118_v24 }
 0x159   :  { %s151_s13 = spop %150 }
 0x15a   :  { %v120_v26 = vstv %s151_s13 }
 0x15b   :  { %v121_v27 = vsub.f32 %v107_v25, %v120_v26 }
 0x15d   :  { %123 = vst.msk [vmem:[#allocation2] sm:$0x1] %vm70_vm10, %v121_v27 }
 0x15e   :  { %176 = shalt.err (!%p173_p4)
}
 0x15f   :  { %s177_s18 = scalar_lea.hbm %s232_s2, 16 }
 0x160   :  { %p178_p5 = scmp.ne.s32.totalorder %s232_s2, %s177_s18  ;;  %p181_p6 = scmp.lt.u32.totalorder %s177_s18, %s232_s2 }
 0x162   :  { %p183_p7 = pnand %p181_p6, %p178_p5 }
 0x164   :  { %186 = shalt.err (!%p183_p7)
}
 0x165   :  { %133 = dma.vmem_to_hbm [thread:$0]  %s131_s1, 16, %s232_s2, [#allocation3]  }
 0x166   :  { %187 = dma.done.wait [#allocation3], 16  }
 0x167   :  { %188 = vsyncadd [#allocation3], 4294967280 }
 0x168   :  { %137 = vsyncpa [#allocation3], 1 }

</bundles_post_ra>
